<compile_context>
chip_gen: v7x
topology: tpu7x:2x2x1
jax: 0.10.0
libtpu: 0.0.40
codegen_flags: <defaults>
</compile_context>

<pallas_src>
import jax
import jax.numpy as jnp
from jax.experimental import pallas as pl
from jax.experimental.pallas import tpu as pltpu

HIDDEN = 128
IN_DIM = 2
OUT_DIM = 2

# Packed-parameter slab row layout (rows 8-aligned where it matters).
_W1_R = 0        # rows [0, 2)    : fc1 weight  [2, 128]
_B1_R = 2        # row  2         : fc1 bias    [1, 128]
_W2_R = 8        # rows [8, 136)  : fc2 weight  [128, 128]
_B2_R = 136      # row  136       : fc2 bias    [1, 128]
_W3_R = 144      # rows [144, 272): fc3 weight  [128, 128] (cols >= 2 are zero)
_B3_R = 272      # row  272       : fc3 bias    [1, 128]   (cols >= 2 are zero)
_SLAB_ROWS = 280  # multiple of 8


def qnet_kernel(x_ref, p_ref, q_ref, act_ref):
    x = x_ref[...]                                     # [TB, 2]

    # ---- fc1 + ReLU: K=2 contraction done on the VPU (two FMAs), not the MXU.
    w1r0 = p_ref[_W1_R:_W1_R + 1, :]                   # [1, 128]
    w1r1 = p_ref[_W1_R + 1:_W1_R + 2, :]               # [1, 128]
    b1 = p_ref[_B1_R:_B1_R + 1, :]                     # [1, 128]
    h1 = x[:, 0:1] * w1r0 + x[:, 1:2] * w1r1 + b1      # [TB, 128]
    h1 = jnp.maximum(h1, 0.0)

    # ---- fc2 + ReLU: 128x128 MXU matmul, f32 accumulation.
    w2 = p_ref[_W2_R:_W2_R + HIDDEN, :]                # [128, 128]
    b2 = p_ref[_B2_R:_B2_R + 1, :]                     # [1, 128]
    h2 = jnp.dot(h1, w2, preferred_element_type=jnp.float32) + b2
    h2 = jnp.maximum(h2, 0.0)                          # [TB, 128]

    # ---- fc3: weight zero-padded to 128 lanes -> lane-dense output store.
    w3 = p_ref[_W3_R:_W3_R + HIDDEN, :]                # [128, 128]
    b3 = p_ref[_B3_R:_B3_R + 1, :]                     # [1, 128]
    q = jnp.dot(h2, w3, preferred_element_type=jnp.float32) + b3   # [TB, 128]
    q_ref[...] = q

    # ---- fused greedy action: argmax over the 2 real Q columns (ties -> 0,
    # matching argmax's first-max convention).
    act_ref[...] = (q[:, 1:2] > q[:, 0:1]).astype(jnp.int32)       # [TB, 1]


def pack_params(params):
    """Pack (w1,b1,w2,b2,w3,b3) into one [280,128] f32 slab (do this ONCE per
    weight update, not per forward call)."""
    w1, b1, w2, b2, w3, b3 = params
    slab = jnp.zeros((_SLAB_ROWS, HIDDEN), jnp.float32)
    slab = slab.at[_W1_R:_W1_R + IN_DIM, :].set(w1)
    slab = slab.at[_B1_R:_B1_R + 1, :].set(b1.reshape(1, HIDDEN))
    slab = slab.at[_W2_R:_W2_R + HIDDEN, :].set(w2)
    slab = slab.at[_B2_R:_B2_R + 1, :].set(b2.reshape(1, HIDDEN))
    slab = slab.at[_W3_R:_W3_R + HIDDEN, :OUT_DIM].set(w3)
    slab = slab.at[_B3_R:_B3_R + 1, :OUT_DIM].set(b3.reshape(1, OUT_DIM))
    return slab


def _round_up(n, m):
    return ((n + m - 1) // m) * m


def qnet_forward(x, packed_params, *, return_action=False):
    """Forward pass. Returns Q-values [B, 2] (and optionally the fused greedy
    int32 action [B])."""
    B = x.shape[0]
    TB = min(256, _round_up(max(B, 1), 8))     # batch tile, multiple of 8
    Bp = _round_up(B, TB)
    if Bp != B:
        x = jnp.pad(x, ((0, Bp - B), (0, 0)))
    grid = (Bp // TB,)

    q_pad, act = pl.pallas_call(
        qnet_kernel,
        out_shape=(
            jax.ShapeDtypeStruct((Bp, HIDDEN), jnp.float32),
            jax.ShapeDtypeStruct((Bp, 1), jnp.int32),
        ),
        grid=grid,
        in_specs=[
            pl.BlockSpec((TB, IN_DIM), lambda i: (i, 0)),
            # Constant block index -> weight slab stays VMEM-resident across
            # all batch tiles (single DMA).
            pl.BlockSpec((_SLAB_ROWS, HIDDEN), lambda i: (0, 0)),
        ],
        out_specs=(
            pl.BlockSpec((TB, HIDDEN), lambda i: (i, 0)),
            pl.BlockSpec((TB, 1), lambda i: (i, 0)),
        ),
        compiler_params=pltpu.CompilerParams(
            dimension_semantics=("parallel",),
        ),
    )(x, packed_params)

    q = q_pad[:B, :OUT_DIM]
    if return_action:
        return q, act[:B, 0]
    return q


def init_params(key):
    """Deterministic init matching nn.Linear's U(-1/sqrt(fan_in), 1/sqrt(fan_in))."""
    def linear(key, fan_in, fan_out):
        kw, kb = jax.random.split(key)
        bound = 1.0 / jnp.sqrt(jnp.float32(fan_in))
        w = jax.random.uniform(kw, (fan_in, fan_out), jnp.float32, -bound, bound)
        b = jax.random.uniform(kb, (1, fan_out), jnp.float32, -bound, bound)
        return w, b

    k1, k2, k3 = jax.random.split(key, 3)
    w1, b1 = linear(k1, IN_DIM, HIDDEN)
    w2, b2 = linear(k2, HIDDEN, HIDDEN)
    w3, b3 = linear(k3, HIDDEN, OUT_DIM)
    return (w1, b1, w2, b2, w3, b3)


def qnet_reference(x, params):
    w1, b1, w2, b2, w3, b3 = params
    h1 = jnp.maximum(x @ w1 + b1, 0.0)
    h2 = jnp.maximum(h1 @ w2 + b2, 0.0)
    return h2 @ w3 + b3


if __name__ == "__main__":
    key = jax.random.PRNGKey(0)
    kx, kp = jax.random.split(key)

    batch = 8
    x = jax.random.normal(kx, (batch, IN_DIM), jnp.float32)  # observation: 2 features
    params = init_params(kp)
    packed = pack_params(params)   # pack once; per-call inputs drop from 7 to 2

    # TODO(synk): sample_action's epsilon coin-flip / random.randint is host-side
    # Python control flow (not part of forward); only the greedy argmax is fused.
    q, act = qnet_forward(x, packed, return_action=True)
    q = jax.block_until_ready(q)
    act = jax.block_until_ready(act)

    ref = qnet_reference(x, params)
    assert q.shape == (batch, OUT_DIM)
    assert jnp.allclose(q, ref, atol=1e-5, rtol=1e-5)
    assert jnp.array_equal(act, jnp.argmax(ref, axis=-1).astype(jnp.int32))

    print("KERNEL_OK")
</pallas_src>

<mosaic_0001>
module attributes {stable_mosaic.version = 11 : i64} {
  func.func @qnet_kernel(%arg0: i32, %arg1: memref<8x2xf32, #tpu.memory_space<vmem>>, %arg2: memref<280x128xf32, #tpu.memory_space<vmem>>, %arg3: memref<8x128xf32, #tpu.memory_space<vmem>>, %arg4: memref<8x1xi32, #tpu.memory_space<vmem>>) attributes {dimension_semantics = [#tpu.dimension_semantics<parallel>], iteration_bounds = array<i64: 1>, scalar_prefetch = 0 : i64, scratch_operands = 0 : i64, tpu.core_type = #tpu.core_type<tc>, window_params = [{transform_indices = @transform_0, window_bounds = array<i64: 8, 2>}, {pipeline_mode = #tpu.pipeline_mode<synchronous>, transform_indices = @transform_1, window_bounds = array<i64: 280, 128>}, {transform_indices = @transform_2, window_bounds = array<i64: 8, 128>}, {transform_indices = @transform_3, window_bounds = array<i64: 8, 1>}]} {
    %c0 = arith.constant 0 : index
    %c0_0 = arith.constant 0 : index
    %0 = vector.load %arg1[%c0, %c0_0] : memref<8x2xf32, #tpu.memory_space<vmem>>, vector<8x2xf32>
    %c0_1 = arith.constant 0 : index
    %c0_2 = arith.constant 0 : index
    %1 = vector.load %arg2[%c0_1, %c0_2] : memref<280x128xf32, #tpu.memory_space<vmem>>, vector<1x128xf32>
    %c1 = arith.constant 1 : index
    %c0_3 = arith.constant 0 : index
    %2 = vector.load %arg2[%c1, %c0_3] : memref<280x128xf32, #tpu.memory_space<vmem>>, vector<1x128xf32>
    %c2 = arith.constant 2 : index
    %c0_4 = arith.constant 0 : index
    %3 = vector.load %arg2[%c2, %c0_4] : memref<280x128xf32, #tpu.memory_space<vmem>>, vector<1x128xf32>
    %4 = vector.extract_strided_slice %0 {offsets = [0, 0], sizes = [8, 1], strides = [1, 1]} : vector<8x2xf32> to vector<8x1xf32>
    %5 = vector.broadcast %4 : vector<8x1xf32> to vector<8x128xf32>
    %6 = vector.broadcast %1 : vector<1x128xf32> to vector<8x128xf32>
    %7 = arith.mulf %5, %6 : vector<8x128xf32>
    %8 = vector.extract_strided_slice %0 {offsets = [0, 1], sizes = [8, 1], strides = [1, 1]} : vector<8x2xf32> to vector<8x1xf32>
    %9 = vector.broadcast %8 : vector<8x1xf32> to vector<8x128xf32>
    %10 = vector.broadcast %2 : vector<1x128xf32> to vector<8x128xf32>
    %11 = arith.mulf %9, %10 : vector<8x128xf32>
    %12 = arith.addf %7, %11 : vector<8x128xf32>
    %13 = vector.broadcast %3 : vector<1x128xf32> to vector<8x128xf32>
    %14 = arith.addf %12, %13 : vector<8x128xf32>
    %cst = arith.constant 0.000000e+00 : f32
    %15 = vector.broadcast %cst : f32 to vector<8x128xf32>
    %16 = arith.maximumf %14, %15 : vector<8x128xf32>
    %c8 = arith.constant 8 : index
    %c0_5 = arith.constant 0 : index
    %17 = vector.load %arg2[%c8, %c0_5] : memref<280x128xf32, #tpu.memory_space<vmem>>, vector<128x128xf32>
    %c136 = arith.constant 136 : index
    %c0_6 = arith.constant 0 : index
    %18 = vector.load %arg2[%c136, %c0_6] : memref<280x128xf32, #tpu.memory_space<vmem>>, vector<1x128xf32>
    %cst_7 = arith.constant dense<0.000000e+00> : vector<8x128xf32>
    %19 = tpu.matmul %16, %17, %cst_7 {dimension_numbers = #tpu.dot_dimension_numbers<[1], [0], [0], [1], [0, 0, 1, 1], [], []>} : vector<8x128xf32>, vector<128x128xf32>, vector<8x128xf32> -> vector<8x128xf32>
    %20 = vector.broadcast %18 : vector<1x128xf32> to vector<8x128xf32>
    %21 = arith.addf %19, %20 : vector<8x128xf32>
    %cst_8 = arith.constant 0.000000e+00 : f32
    %22 = vector.broadcast %cst_8 : f32 to vector<8x128xf32>
    %23 = arith.maximumf %21, %22 : vector<8x128xf32>
    %c144 = arith.constant 144 : index
    %c0_9 = arith.constant 0 : index
    %24 = vector.load %arg2[%c144, %c0_9] : memref<280x128xf32, #tpu.memory_space<vmem>>, vector<128x128xf32>
    %c272 = arith.constant 272 : index
    %c0_10 = arith.constant 0 : index
    %25 = vector.load %arg2[%c272, %c0_10] : memref<280x128xf32, #tpu.memory_space<vmem>>, vector<1x128xf32>
    %cst_11 = arith.constant dense<0.000000e+00> : vector<8x128xf32>
    %26 = tpu.matmul %23, %24, %cst_11 {dimension_numbers = #tpu.dot_dimension_numbers<[1], [0], [0], [1], [0, 0, 1, 1], [], []>} : vector<8x128xf32>, vector<128x128xf32>, vector<8x128xf32> -> vector<8x128xf32>
    %27 = vector.broadcast %25 : vector<1x128xf32> to vector<8x128xf32>
    %28 = arith.addf %26, %27 : vector<8x128xf32>
    %c0_12 = arith.constant 0 : index
    %c0_13 = arith.constant 0 : index
    %29 = vector.load %arg3[%c0_12, %c0_13] : memref<8x128xf32, #tpu.memory_space<vmem>>, vector<8x128xf32>
    tpu.vector_store %arg3[%c0_12, %c0_13], %28 {strides = array<i32>} : memref<8x128xf32, #tpu.memory_space<vmem>>, vector<8x128xf32>,
    %30 = vector.extract_strided_slice %28 {offsets = [0, 1], sizes = [8, 1], strides = [1, 1]} : vector<8x128xf32> to vector<8x1xf32>
    %31 = vector.extract_strided_slice %28 {offsets = [0, 0], sizes = [8, 1], strides = [1, 1]} : vector<8x128xf32> to vector<8x1xf32>
    %32 = arith.cmpf ogt, %30, %31 : vector<8x1xf32>
    %33 = arith.extui %32 : vector<8x1xi1> to vector<8x1xi32>
    %c0_14 = arith.constant 0 : index
    %c0_15 = arith.constant 0 : index
    %34 = vector.load %arg4[%c0_14, %c0_15] : memref<8x1xi32, #tpu.memory_space<vmem>>, vector<8x1xi32>
    tpu.vector_store %arg4[%c0_14, %c0_15], %33 {strides = array<i32>} : memref<8x1xi32, #tpu.memory_space<vmem>>, vector<8x1xi32>,
    return
  }
  func.func @transform_0(%arg0: i32) -> (i32, i32) {
    %c0_i32 = arith.constant 0 : i32
    %c0_i32_0 = arith.constant 0 : i32
    return %arg0, %c0_i32 : i32, i32
  }
  func.func @transform_1(%arg0: i32) -> (i32, i32) {
    %c0_i32 = arith.constant 0 : i32
    %c0_i32_0 = arith.constant 0 : i32
    %c0_i32_1 = arith.constant 0 : i32
    return %c0_i32, %c0_i32_0 : i32, i32
  }
  func.func @transform_2(%arg0: i32) -> (i32, i32) {
    %c0_i32 = arith.constant 0 : i32
    %c0_i32_0 = arith.constant 0 : i32
    return %arg0, %c0_i32 : i32, i32
  }
  func.func @transform_3(%arg0: i32) -> (i32, i32) {
    %c0_i32 = arith.constant 0 : i32
    %c0_i32_0 = arith.constant 0 : i32
    return %arg0, %c0_i32 : i32, i32
  }
}

</mosaic_0001>

<bundles_post_ra>
// kernel: tpu_custom_call.1
= control target key start
LH: loop header
LB: loop body
LE: loop exit
PB: predicated region body
PF: predicated region fallthrough
CT: control target
= control target key end

     0   :  { %9 = vsyncpa [#allocation3], 0  ;;  %s568_s0 = inlined_call_operand.vmem [shape: f32[8,2], index: 0, kind: input, shape index: {}]   ;;  %s569_s1 = inlined_call_operand.hbm [shape: f32[280,128], index: 1, kind: input, shape index: {}]   ;;  %s570_s2 = inlined_call_operand.hbm [shape: f32[8,128], index: 2, kind: output, shape index: {0}]   ;;  %s571_s3 = inlined_call_operand.vmem [shape: s32[8,1], index: 3, kind: output, shape index: {1}]  }
   0x1   :  { %10 = vsyncpa [#allocation4], 0  ;;  %s489_s12 = smov [#allocation2]   ;;  %s441_s16 = scalar_lea.hbm %s569_s1, 4480 }
   0x2   :  { %s18_s13 = sshll.u32 %s489_s12, 4  ;;  %p442_p0 = scmp.ne.s32.totalorder %s569_s1, %s441_s16  ;;  %s19_s13 = int_to_ptr.vmem [resolvable:$true] %s18_s13 }
   0x3   :  { %p445_p1 = scmp.lt.u32.totalorder %s441_s16, %s569_s1 }
   0x5   :  { %p447_p2 = pnand %p445_p1, %p442_p0 }
   0x7   :  { %450 = shalt.err (!%p447_p2)
}
   0x8   :  { %s451_s21 = scalar_lea.vmem %s19_s13, 4480  ;;  %p456_p4 = scmp.lt.s32.totalorder %s19_s13, %s19_s13 }
   0x9   :  { %p452_p3 = scmp.ne.s32.totalorder %s19_s13, %s451_s21  ;;  %p457_p5 = scmp.lt.s32.totalorder %s451_s21, %s451_s21 }
   0xb   :  { %p458_p6 = por %p457_p5, %p456_p4 }
   0xd   :  { %p459_p7 = pnand %p458_p6, %p452_p3 }
   0xf   :  { %462 = shalt.err (!%p459_p7)
}
  0x10   :  { %s490_s22 = smov 128   ;;  %s491_s23 = smov 8  }
  0x11   :  { %24 = dma.hbm_to_vmem [thread:$0]  %s569_s1, 4480, %s19_s13, [#allocation3], %s490_s22, %s490_s22, %s491_s23  }
  0x12   :  { %485 = dma.done.wait [#allocation3], 4480  }
  0x13   :  { %486 = vsyncadd [#allocation3], 4294962816  ;;  %v492_v0 = vmov 0   ;;  %v493_v1 = vmov 0.0|0.0   ;;  %v28_v2 = vld [vmem:[%s568_s0] sm:$0xff]  ;;  %v58_v3 = vld [vmem:[#allocation2 + $0x8] sm:$0xff] }
  0x14   :  { %439 = vset.pattern.permute.xlu0 %v492_v0  ;;  %380 = vmatprep.subr.bf16.mxu0 %v493_v1  ;;  %v59_v4 = vld [vmem:[#allocation2 + $0x10] sm:$0xff]  ;;  %v60_v6 = vld [vmem:[#allocation2 + $0x18] sm:$0xff]  ;;  %v61_v7 = vld [vmem:[#allocation2 + $0x20] sm:$0xff]  ;;  %v494_v11 = vmov 1   ;;  %vm495_vm0 = vmmov 0   ;;  %v496_v15 = vmov 0.0  }
  0x15   :  { %404 = vmatprep.subr.bf16.mxu1 %v493_v1  ;;  %34 = vperm.xlu0 %439, %v28_v2   ;;  %v381_v5 = vpack.c.bf16 %v59_v4, %v58_v3  ;;  %v384_v8 = vpack.c.bf16 %v61_v7, %v60_v6  ;;  %v62_v9 = vld [vmem:[#allocation2 + $0x28] sm:$0xff]  ;;  %v63_v10 = vld [vmem:[#allocation2 + $0x30] sm:$0xff]  ;;  %v64_v13 = vld [vmem:[#allocation2 + $0x38] sm:$0xff]  ;;  %s497_s0 = smov 1   ;;  %s498_s1 = smov [#allocation5]  }
  0x16   :  { %v387_v12 = vpack.c.bf16 %v63_v10, %v62_v9  ;;  %v65_v14 = vld [vmem:[#allocation2 + $0x40] sm:$0xff]  ;;  %342 = vmatprep.mubr.msk.f32.mxu0 %vm495_vm0, %v496_v15  ;;  %377 = vmatprep.mubr.msk.f32.mxu1 %vm495_vm0, %v496_v15  ;;  %v66_v17 = vld [vmem:[#allocation2 + $0x48] sm:$0xff]  ;;  %v67_v18 = vld [vmem:[#allocation2 + $0x50] sm:$0xff]  ;;  %s258_s28 = sshll.u32 %s498_s1, 4  ;;  %s259_s28 = int_to_ptr.vmem [resolvable:$true] %s258_s28 }
  0x17   :  { %382 = vmatpush3.bf16.msra.mxu0 %v381_v5  ;;  %v390_v16 = vpack.c.bf16 %v65_v14, %v64_v13  ;;  %v150_v19 = vld [vmem:[#allocation2 + $0x90] sm:$0xff]  ;;  %v151_v20 = vld [vmem:[#allocation2 + $0x98] sm:$0xff]  ;;  %v152_v21 = vld [vmem:[#allocation2 + $0xa0] sm:$0xff]  ;;  %v393_v22 = vpack.c.bf16 %v67_v18, %v66_v17  ;;  %s463_s29 = scalar_lea.vmem %s259_s28, 128  ;;  %p468_p9 = scmp.lt.s32.totalorder %s259_s28, %s259_s28 }
  0x18   :  { %383 = vmatprep.subr.bf16.mxu0 %v493_v1  ;;  %v405_v23 = vpack.c.bf16 %v151_v20, %v150_v19  ;;  %v153_v24 = vld [vmem:[#allocation2 + $0xa8] sm:$0xff]  ;;  %v68_v25 = vld [vmem:[#allocation2 + $0x58] sm:$0xff]  ;;  %v69_v26 = vld [vmem:[#allocation2 + $0x60] sm:$0xff]  ;;  %p464_p8 = scmp.ne.s32.totalorder %s259_s28, %s463_s29  ;;  %p469_p10 = scmp.lt.s32.totalorder %s463_s29, %s463_s29 }
  0x19   :  { %440 = vset.pattern.permute.xlu0 %v494_v11  ;;  %v408_v27 = vpack.c.bf16 %v153_v24, %v152_v21  ;;  %v154_v28 = vld [vmem:[#allocation2 + $0xb0] sm:$0xff]  ;;  %v155_v29 = vld [vmem:[#allocation2 + $0xb8] sm:$0xff]  ;;  %v396_v30 = vpack.c.bf16 %v69_v26, %v68_v25  ;;  %v70_v31 = vld [vmem:[#allocation2 + $0x68] sm:$0xff] }
  0x1a   :  { %43 = vperm.xlu0 %440, %v28_v2   ;;  %406 = vmatpush3.bf16.msra.mxu1 %v405_v23  ;;  %v71_v32 = vld [vmem:[#allocation2 + $0x70] sm:$0xff]  ;;  %v411_v33 = vpack.c.bf16 %v155_v29, %v154_v28  ;;  %v156_v34 = vld [vmem:[#allocation2 + $0xc0] sm:$0xff]  ;;  %v157_v35 = vld [vmem:[#allocation2 + $0xc8] sm:$0xff]  ;;  %p470_p11 = por %p469_p10, %p468_p9 }
  0x1b   :  { %385 = vmatpush3.bf16.msra.mxu0 %v384_v8  ;;  %407 = vmatprep.subr.bf16.mxu1 %v493_v1  ;;  %v399_v36 = vpack.c.bf16 %v71_v32, %v70_v31  ;;  %v72_v37 = vld [vmem:[#allocation2 + $0x78] sm:$0xff]  ;;  %v73_v38 = vld [vmem:[#allocation2 + $0x80] sm:$0xff]  ;;  %v414_v39 = vpack.c.bf16 %v157_v35, %v156_v34  ;;  %v158_v40 = vld [vmem:[#allocation2 + $0xd0] sm:$0xff] }
  0x1c   :  { %386 = vmatprep.subr.bf16.mxu0 %v493_v1  ;;  %v159_v41 = vld [vmem:[#allocation2 + $0xd8] sm:$0xff]  ;;  %v402_v42 = vpack.c.bf16 %v73_v38, %v72_v37  ;;  %v160_v44 = vld [vmem:[#allocation2 + $0xe0] sm:$0xff]  ;;  %v161_v45 = vld [vmem:[#allocation2 + $0xe8] sm:$0xff]  ;;  %p471_p12 = pnand %p470_p11, %p464_p8 }
  0x1d   :  { %v417_v43 = vpack.c.bf16 %v159_v41, %v158_v40  ;;  %v420_v46 = vpack.c.bf16 %v161_v45, %v160_v44  ;;  %v162_v47 = vld [vmem:[#allocation2 + $0xf0] sm:$0xff]  ;;  %v163_v48 = vld [vmem:[#allocation2 + $0xf8] sm:$0xff]  ;;  %v271_v51 = vld [vmem:[#allocation2] ss:$0 sm:$0xff] }
  0x1e   :  { %409 = vmatpush3.bf16.msra.mxu1 %v408_v27  ;;  %v423_v49 = vpack.c.bf16 %v163_v48, %v162_v47  ;;  %v272_v52 = vld [vmem:[#allocation2 + $0x1] ss:$0 sm:$0xff]  ;;  %v273_v56 = vld [vmem:[#allocation2 + $0x2] ss:$0 sm:$0xff]  ;;  %v165_v61 = vld [vmem:[#allocation2 + $0x108] sm:$0xff] }
  0x1f   :  { %388 = vmatpush3.bf16.msra.mxu0 %v387_v12  ;;  %410 = vmatprep.subr.bf16.mxu1 %v493_v1  ;;  %v164_v60 = vld [vmem:[#allocation2 + $0x100] sm:$0xff]  ;;  %v274_v63 = vld [vmem:[#allocation2 + $0x88] ss:$0 sm:$0xff]  ;;  %v275_v5 = vld [vmem:[#allocation2 + $0x110] ss:$0 sm:$0xff] }
  0x20   :  { %389 = vmatprep.subr.bf16.mxu0 %v493_v1  ;;  %v426_v62 = vpack.c.bf16 %v165_v61, %v164_v60 }
  0x22   :  { %412 = vmatpush3.bf16.msra.mxu1 %v411_v33 }
  0x23   :  { %391 = vmatpush3.bf16.msra.mxu0 %v390_v16  ;;  %413 = vmatprep.subr.bf16.mxu1 %v493_v1 }
  0x24   :  { %392 = vmatprep.subr.bf16.mxu0 %v493_v1 }
  0x26   :  { %415 = vmatpush3.bf16.msra.mxu1 %v414_v39 }
  0x27   :  { %394 = vmatpush3.bf16.msra.mxu0 %v393_v22  ;;  %416 = vmatprep.subr.bf16.mxu1 %v493_v1 }
  0x28   :  { %395 = vmatprep.subr.bf16.mxu0 %v493_v1 }
  0x2a   :  { %418 = vmatpush3.bf16.msra.mxu1 %v417_v43 }
  0x2b   :  { %397 = vmatpush3.bf16.msra.mxu0 %v396_v30  ;;  %419 = vmatprep.subr.bf16.mxu1 %v493_v1 }
  0x2c   :  { %398 = vmatprep.subr.bf16.mxu0 %v493_v1 }
  0x2e   :  { %421 = vmatpush3.bf16.msra.mxu1 %v420_v46 }
  0x2f   :  { %400 = vmatpush3.bf16.msra.mxu0 %v399_v36  ;;  %422 = vmatprep.subr.bf16.mxu1 %v493_v1 }
  0x30   :  { %401 = vmatprep.subr.bf16.mxu0 %v493_v1 }
  0x32   :  { %424 = vmatpush3.bf16.msra.mxu1 %v423_v49 }
  0x33   :  { %403 = vmatpush3.bf16.msra.mxu0 %v402_v42  ;;  %425 = vmatprep.subr.bf16.mxu1 %v493_v1 }
  0x36   :  { %427 = vmatpush3.bf16.msra.mxu1 %v426_v62 }
  0x94   :  { %v35_v50 = vpop.permute.xlu0 %34 }
  0x95   :  { %v41_v54 = vmul.f32 %v271_v51, %v35_v50 }
  0x99   :  { %v44_v53 = vpop.permute.xlu0 %43 }
  0x9a   :  { %v50_v55 = vmul.f32 %v272_v52, %v44_v53 }
  0x9c   :  { %v51_v57 = vadd.f32 %v50_v55, %v41_v54 }
  0x9e   :  { %v56_v58 = vadd.f32 %v273_v56, %v51_v57 }
  0xa0   :  { %v57_v59 = vmax.f32 %v56_v58, 0.0 }
  0xa2   :  { %343 = vmatmul.mubr.f32.vlgmr.msra.gmra.mrb[0].mxu0 %v57_v59 }
 0x175   :  { %v145_v2 = vpop.f32.mrb[0].mxu0 }
 0x176   :  { %v146_v3 = vadd.f32 %v274_v63, %v145_v2  ;;  %v344_v4 = vpop.f32.mrb[1].mxu0 }
 0x178   :  { %v149_v1 = vmax.f32 %v146_v3, 0.0 }
 0x17a   :  { %378 = vmatmul.mubr.f32.vlgmr.msra.gmra.mrb[0].mxu1 %v149_v1 }
 0x24d   :  { %v237_v6 = vpop.f32.mrb[0].mxu1 }
 0x24e   :  { %v238_v7 = vadd.f32 %v275_v5, %v237_v6  ;;  %v379_v8 = vpop.f32.mrb[1].mxu1 }
 0x250   :  { %241 = vst [vmem:[#allocation5] sm:$0xff] %v238_v7  ;;  %243 = vrot.lane.b32.xlu1 %v238_v7, %s497_s0 }
 0x251   :  { %474 = shalt.err (!%p471_p12)
}
 0x252   :  { %s475_s5 = scalar_lea.hbm %s570_s2, 128 }
 0x253   :  { %p476_p13 = scmp.ne.s32.totalorder %s570_s2, %s475_s5  ;;  %p479_p0 = scmp.lt.u32.totalorder %s475_s5, %s570_s2 }
 0x255   :  { %p481_p1 = pnand %p479_p0, %p476_p13 }
 0x257   :  { %484 = shalt.err (!%p481_p1)
}
 0x258   :  { %261 = dma.vmem_to_hbm [thread:$0]  %s259_s28, 128, %s570_s2, [#allocation4]   ;;  %vm250_vm2 = vcmask 7168  }
 0x259   :  { %s499_s12 = smov 127  }
 0x2c2   :  { %v244_v9 = vpop.permute.xlu1 %243 }
 0x2c3   :  { %vm246_vm1 = vcmp.gt.f32.partialorder %v238_v7, %v244_v9 }
 0x2c4   :  { %v247_v10 = vsel %vm246_vm1, 1, %v492_v0 }
 0x2c5   :  { %248 = vrot.lane.b32.xlu1 %v247_v10, %s499_s12 }
 0x337   :  { %v249_v11 = vpop.permute.xlu1 %248 }
 0x338   :  { %251 = vst.msk [vmem:[%s571_s3] sm:$0xff] %vm250_vm2, %v249_v11 }
 0x339   :  { %487 = dma.done.wait [#allocation4], 128  }
 0x33a   :  { %488 = vsyncadd [#allocation4], 4294967168 }
 0x33b   :  { %269 = vsyncpa [#allocation3], 1 }
 0x33c   :  { %270 = vsyncpa [#allocation4], 1 }

</bundles_post_ra>
